<compile_context>
chip_gen: v5e
topology: v5e:2x2
jax: 0.10.0
libtpu: 0.0.40
codegen_flags: <defaults>
</compile_context>

<pallas_src>
import functools

import jax
import jax.numpy as jnp
from jax import lax
from jax.experimental import pallas as pl
from jax.experimental.pallas import tpu as pltpu


def _attention_kernel(xq_ref, xkv_ref, wq_ref, wkv_ref, wo_ref, bo_ref,
                      o_ref, k_scr, v_scr, oh_scr, *, heads, dim_head):
    # xq_ref : (1, TQ, D)   bf16 query-tile slice of x
    # xkv_ref: (1, N,  D)   bf16 full-sequence slice of x (K/V source; its
    #                       block index is constant along qi, so it is DMA'd
    #                       only when the batch index changes)
    # wq_ref : (H, D, Dh)   bf16, softmax scale pre-folded
    # wkv_ref: (H, D, 2*Dh) bf16, [K | V] fused per head (lane-dense)
    # wo_ref : (H*Dh, D)    bf16
    # bo_ref : (1, D)       f32
    # o_ref  : (1, TQ, D)
    # k_scr, v_scr: (H, N, Dh) bf16 persistent K/V scratch (rebuilt at qi==0)
    # oh_scr : (TQ, H*Dh)   bf16 packed per-head outputs (per query tile)
    qi = pl.program_id(1)

    # --- K/V projection: once per batch, not per query tile -----------------
    @pl.when(qi == 0)
    def _build_kv():
        xkv = xkv_ref[0]                                       # (N, D) bf16
        for h in range(heads):                                 # static loop
            kv = jnp.dot(xkv, wkv_ref[h],
                         preferred_element_type=jnp.float32)   # (N, 2*Dh) f32
            kv = kv.astype(jnp.bfloat16)
            k_scr[h] = kv[:, :dim_head]
            v_scr[h] = kv[:, dim_head:]

    # --- per-query-tile attention -------------------------------------------
    xq = xq_ref[0]                                             # (TQ, D) bf16

    # Static per-head loop: each head ends with a scratch store, so live
    # ranges are bounded per head (no carried accumulator across heads).
    for h in range(heads):
        # q already carries the softmax scale (folded into wq in the wrapper).
        q = jnp.dot(xq, wq_ref[h],
                    preferred_element_type=jnp.float32).astype(jnp.bfloat16)

        # scores = q @ k^T  (nt-form dot_general, no explicit transpose)
        s = lax.dot_general(q, k_scr[h], (((1,), (1,)), ((), ())),
                            preferred_element_type=jnp.float32)   # (TQ, N)

        # Softmax in fp32 (VPU/EUP); normalization deferred to the head out.
        m = jnp.max(s, axis=-1, keepdims=True)
        e = jnp.exp(s - m)                                         # (TQ, N)
        l = jnp.sum(e, axis=-1, keepdims=True)                     # (TQ, 1)

        o = jnp.dot(e.astype(jnp.bfloat16), v_scr[h],
                    preferred_element_type=jnp.float32)            # (TQ, Dh)
        o = o * pl.reciprocal(l, approx=True)                      # deferred norm

        oh_scr[:, h * dim_head:(h + 1) * dim_head] = o.astype(jnp.bfloat16)

    # --- deferred output projection: one contraction over H*Dh + bias -------
    y = jnp.dot(oh_scr[...], wo_ref[...],
                preferred_element_type=jnp.float32)                # (TQ, D)
    o_ref[0] = (y + bo_ref[0]).astype(o_ref.dtype)


def _padded_buf_bytes(shape, dtype):
    """Rough VMEM footprint of one buffer: last dim padded to 128 lanes,
    second-to-last padded to the dtype's sublane multiple."""
    dt = jnp.dtype(dtype)
    pack = max(1, 4 // dt.itemsize)
    dims = list(shape)
    if len(dims) >= 1:
        dims[-1] = -(-dims[-1] // 128) * 128
    if len(dims) >= 2:
        sub = 8 * pack
        dims[-2] = -(-dims[-2] // sub) * sub
    n = 1
    for d in dims:
        n *= d
    return n * dt.itemsize


def attention_forward(x, w_qkv, w_out, b_out, *, heads, dim_head):
    """x: (B, N, D); w_qkv: (D, 3*heads*dim_head); w_out: (heads*dim_head, D);
    b_out: (D,). Returns (B, N, D)."""
    B, N, D = x.shape
    inner = heads * dim_head
    scale = float(dim_head) ** -0.5

    # Query tiling: 256 fills the v6e/v7x 256-wide MXU; 128 fallback; tiny N
    # runs as a single tile.
    if N % 256 == 0:
        TQ = 256
    elif N % 128 == 0:
        TQ = 128
    else:
        TQ = N
    nq = N // TQ

    # Head-major bf16 weights. Softmax scale is folded into wq; K/V weights
    # are fused per head into one lane-dense (D, 2*Dh) block.
    w = w_qkv.reshape(D, 3, heads, dim_head)                     # (D, 3, H, Dh)
    wq = (w[:, 0].transpose(1, 0, 2) * scale).astype(jnp.bfloat16)       # (H, D, Dh)
    wkv = jnp.concatenate([w[:, 1], w[:, 2]], axis=-1)                   # (D, H, 2Dh)
    wkv = wkv.transpose(1, 0, 2).astype(jnp.bfloat16)                    # (H, D, 2Dh)
    wo = w_out.astype(jnp.bfloat16)                                      # (inner, D)
    b2 = b_out.reshape(1, D).astype(jnp.float32)
    xb = x.astype(jnp.bfloat16)                                          # bf16 activations

    # VMEM budget from actual (padded) block sizes: double-buffered streamed
    # blocks + weights, single scratch, plus headroom for the per-head (TQ, N)
    # fp32 softmax temporaries and compiler scratch.
    est = (
        2 * _padded_buf_bytes((1, TQ, D), jnp.bfloat16)          # xq blocks
        + 2 * _padded_buf_bytes((1, N, D), jnp.bfloat16)         # xkv blocks
        + 2 * _padded_buf_bytes((1, TQ, D), x.dtype)             # out blocks
        + 2 * (_padded_buf_bytes((heads, D, dim_head), jnp.bfloat16)
               + _padded_buf_bytes((heads, D, 2 * dim_head), jnp.bfloat16)
               + _padded_buf_bytes((inner, D), jnp.bfloat16)
               + _padded_buf_bytes((1, D), jnp.float32))
        + 2 * _padded_buf_bytes((heads, N, dim_head), jnp.bfloat16)  # k/v scratch
        + _padded_buf_bytes((TQ, inner), jnp.bfloat16)               # o_heads scratch
        + 2 * _padded_buf_bytes((TQ, N), jnp.float32)                # scores/exp spill
    )
    vmem_limit = int(min(max(est + (16 << 20), 24 << 20), 64 << 20))

    kernel = functools.partial(_attention_kernel, heads=heads, dim_head=dim_head)

    return pl.pallas_call(
        kernel,
        out_shape=jax.ShapeDtypeStruct((B, N, D), x.dtype),
        grid_spec=pltpu.PrefetchScalarGridSpec(
            num_scalar_prefetch=0,
            grid=(B, nq),
            in_specs=[
                # query tile of x
                pl.BlockSpec((1, TQ, D), lambda b, qi: (b, qi, 0)),
                # full sequence of x (K/V source) — constant block index
                # along qi, so DMA'd once per batch.
                pl.BlockSpec((1, N, D), lambda b, qi: (b, 0, 0)),
                # resident weights (constant block index)
                pl.BlockSpec((heads, D, dim_head), lambda b, qi: (0, 0, 0)),
                pl.BlockSpec((heads, D, 2 * dim_head), lambda b, qi: (0, 0, 0)),
                pl.BlockSpec((inner, D), lambda b, qi: (0, 0)),
                pl.BlockSpec((1, D), lambda b, qi: (0, 0)),
            ],
            out_specs=pl.BlockSpec((1, TQ, D), lambda b, qi: (b, qi, 0)),
            scratch_shapes=[
                pltpu.VMEM((heads, N, dim_head), jnp.bfloat16),   # K scratch
                pltpu.VMEM((heads, N, dim_head), jnp.bfloat16),   # V scratch
                pltpu.VMEM((TQ, inner), jnp.bfloat16),            # packed head outs
            ],
        ),
        compiler_params=pltpu.CompilerParams(
            # Batch axis parallel (megacore); query-tile axis must be
            # "arbitrary" so the per-batch K/V scratch persists across tiles.
            dimension_semantics=("parallel", "arbitrary"),
            vmem_limit_bytes=vmem_limit,
        ),
    )(xb, xb, wq, wkv, wo, b2)


def attention_ref(x, w_qkv, w_out, b_out, *, heads, dim_head):
    """Plain-JAX (fp32) reference mirroring the PyTorch forward."""
    B, N, D = x.shape
    inner = heads * dim_head
    scale = float(dim_head) ** -0.5
    qkv = x @ w_qkv                                            # (B, N, 3*inner)
    q, k, v = jnp.split(qkv, 3, axis=-1)

    def to_heads(t):                                           # b n (h d) -> b h n d
        return t.reshape(B, N, heads, dim_head).transpose(0, 2, 1, 3)

    q, k, v = map(to_heads, (q, k, v))
    dots = jnp.einsum("bhnd,bhmd->bhnm", q, k) * scale
    attn = jax.nn.softmax(dots, axis=-1)
    out = jnp.einsum("bhnm,bhmd->bhnd", attn, v)
    out = out.transpose(0, 2, 1, 3).reshape(B, N, inner)       # b h n d -> b n (h d)
    return out @ w_out + b_out


if __name__ == "__main__":
    # Small shapes consistent with the module's forward: x is (B, N, dim).
    B, N, dim = 2, 8, 32
    heads, dim_head = 4, 8
    inner = heads * dim_head

    key = jax.random.PRNGKey(0)
    kx, kq, kw, kb = jax.random.split(key, 4)
    x = jax.random.normal(kx, (B, N, dim), dtype=jnp.float32)
    # Deterministic synthetic parameters (shapes from the module's __init__).
    w_qkv = jax.random.normal(kq, (dim, 3 * inner), dtype=jnp.float32) * 0.05
    w_out = jax.random.normal(kw, (inner, dim), dtype=jnp.float32) * 0.05
    b_out = jax.random.normal(kb, (dim,), dtype=jnp.float32) * 0.05

    y = attention_forward(x, w_qkv, w_out, b_out, heads=heads, dim_head=dim_head)
    y = jax.block_until_ready(y)

    y_ref = attention_ref(x, w_qkv, w_out, b_out, heads=heads, dim_head=dim_head)
    # bf16 MXU operands + approx reciprocal -> compare at bf16-appropriate tol.
    assert jnp.allclose(y, y_ref, atol=3e-2, rtol=3e-2), (
        "mismatch vs reference, max abs err = "
        f"{float(jnp.max(jnp.abs(y - y_ref)))}")

    print("KERNEL_OK")
</pallas_src>

<mosaic_0001>
module attributes {stable_mosaic.version = 11 : i64} {
  func.func @_attention_kernel(%arg0: i32, %arg1: i32, %arg2: memref<1x8x32xbf16, #tpu.memory_space<vmem>>, %arg3: memref<1x8x32xbf16, #tpu.memory_space<vmem>>, %arg4: memref<4x32x8xbf16, #tpu.memory_space<vmem>>, %arg5: memref<4x32x16xbf16, #tpu.memory_space<vmem>>, %arg6: memref<32x32xbf16, #tpu.memory_space<vmem>>, %arg7: memref<1x32xf32, #tpu.memory_space<vmem>>, %arg8: memref<1x8x32xf32, #tpu.memory_space<vmem>>, %arg9: memref<4x8x8xbf16, #tpu.memory_space<vmem>>, %arg10: memref<4x8x8xbf16, #tpu.memory_space<vmem>>, %arg11: memref<8x32xbf16, #tpu.memory_space<vmem>>) attributes {dimension_semantics = [#tpu.dimension_semantics<parallel>, #tpu.dimension_semantics<arbitrary>], iteration_bounds = array<i64: 2, 1>, scalar_prefetch = 0 : i64, scratch_operands = 3 : i64, tpu.core_type = #tpu.core_type<tc>, window_params = [{transform_indices = @transform_0, window_bounds = array<i64: 1, 8, 32>}, {transform_indices = @transform_1, window_bounds = array<i64: 1, 8, 32>}, {pipeline_mode = #tpu.pipeline_mode<synchronous>, transform_indices = @transform_2, window_bounds = array<i64: 4, 32, 8>}, {pipeline_mode = #tpu.pipeline_mode<synchronous>, transform_indices = @transform_3, window_bounds = array<i64: 4, 32, 16>}, {pipeline_mode = #tpu.pipeline_mode<synchronous>, transform_indices = @transform_4, window_bounds = array<i64: 32, 32>}, {pipeline_mode = #tpu.pipeline_mode<synchronous>, transform_indices = @transform_5, window_bounds = array<i64: 1, 32>}, {transform_indices = @transform_6, window_bounds = array<i64: 1, 8, 32>}]} {
    %c0_i32 = arith.constant 0 : i32
    %0 = arith.cmpi eq, %arg1, %c0_i32 : i32
    %1 = arith.extui %0 : i1 to i32
    %c0_i32_0 = arith.constant 0 : i32
    %2 = arith.cmpi ne, %1, %c0_i32_0 : i32
    scf.if %2 {
      %c0_70 = arith.constant 0 : index
      %c0_71 = arith.constant 0 : index
      %c0_72 = arith.constant 0 : index
      %108 = vector.load %arg3[%c0_70, %c0_71, %c0_72] : memref<1x8x32xbf16, #tpu.memory_space<vmem>>, vector<1x8x32xbf16>
      %109 = vector.shape_cast %108 : vector<1x8x32xbf16> to vector<8x32xbf16>
      %c0_73 = arith.constant 0 : index
      %c0_74 = arith.constant 0 : index
      %c0_75 = arith.constant 0 : index
      %110 = vector.load %arg5[%c0_73, %c0_74, %c0_75] : memref<4x32x16xbf16, #tpu.memory_space<vmem>>, vector<1x32x16xbf16>
      %111 = vector.shape_cast %110 : vector<1x32x16xbf16> to vector<32x16xbf16>
      %cst_76 = arith.constant dense<0.000000e+00> : vector<8x16xf32>
      %112 = tpu.matmul %109, %111, %cst_76 {dimension_numbers = #tpu.dot_dimension_numbers<[1], [0], [0], [1], [0, 0, 1, 1], [], []>} : vector<8x32xbf16>, vector<32x16xbf16>, vector<8x16xf32> -> vector<8x16xf32>
      %113 = arith.truncf %112 : vector<8x16xf32> to vector<8x16xbf16>
      %114 = vector.extract_strided_slice %113 {offsets = [0, 0], sizes = [8, 8], strides = [1, 1]} : vector<8x16xbf16> to vector<8x8xbf16>
      %c0_77 = arith.constant 0 : index
      %c0_78 = arith.constant 0 : index
      %c0_79 = arith.constant 0 : index
      %115 = vector.load %arg9[%c0_77, %c0_78, %c0_79] : memref<4x8x8xbf16, #tpu.memory_space<vmem>>, vector<1x8x8xbf16>
      %116 = vector.shape_cast %115 : vector<1x8x8xbf16> to vector<8x8xbf16>
      %117 = vector.shape_cast %114 : vector<8x8xbf16> to vector<1x8x8xbf16>
      tpu.vector_store %arg9[%c0_77, %c0_78, %c0_79], %117 {strides = array<i32>} : memref<4x8x8xbf16, #tpu.memory_space<vmem>>, vector<1x8x8xbf16>,
      %118 = vector.extract_strided_slice %113 {offsets = [0, 8], sizes = [8, 8], strides = [1, 1]} : vector<8x16xbf16> to vector<8x8xbf16>
      %c0_80 = arith.constant 0 : index
      %c0_81 = arith.constant 0 : index
      %c0_82 = arith.constant 0 : index
      %119 = vector.load %arg10[%c0_80, %c0_81, %c0_82] : memref<4x8x8xbf16, #tpu.memory_space<vmem>>, vector<1x8x8xbf16>
      %120 = vector.shape_cast %119 : vector<1x8x8xbf16> to vector<8x8xbf16>
      %121 = vector.shape_cast %118 : vector<8x8xbf16> to vector<1x8x8xbf16>
      tpu.vector_store %arg10[%c0_80, %c0_81, %c0_82], %121 {strides = array<i32>} : memref<4x8x8xbf16, #tpu.memory_space<vmem>>, vector<1x8x8xbf16>,
      %c1_83 = arith.constant 1 : index
      %c0_84 = arith.constant 0 : index
      %c0_85 = arith.constant 0 : index
      %122 = vector.load %arg5[%c1_83, %c0_84, %c0_85] : memref<4x32x16xbf16, #tpu.memory_space<vmem>>, vector<1x32x16xbf16>
      %123 = vector.shape_cast %122 : vector<1x32x16xbf16> to vector<32x16xbf16>
      %cst_86 = arith.constant dense<0.000000e+00> : vector<8x16xf32>
      %124 = tpu.matmul %109, %123, %cst_86 {dimension_numbers = #tpu.dot_dimension_numbers<[1], [0], [0], [1], [0, 0, 1, 1], [], []>} : vector<8x32xbf16>, vector<32x16xbf16>, vector<8x16xf32> -> vector<8x16xf32>
      %125 = arith.truncf %124 : vector<8x16xf32> to vector<8x16xbf16>
      %126 = vector.extract_strided_slice %125 {offsets = [0, 0], sizes = [8, 8], strides = [1, 1]} : vector<8x16xbf16> to vector<8x8xbf16>
      %c1_87 = arith.constant 1 : index
      %c0_88 = arith.constant 0 : index
      %c0_89 = arith.constant 0 : index
      %127 = vector.load %arg9[%c1_87, %c0_88, %c0_89] : memref<4x8x8xbf16, #tpu.memory_space<vmem>>, vector<1x8x8xbf16>
      %128 = vector.shape_cast %127 : vector<1x8x8xbf16> to vector<8x8xbf16>
      %129 = vector.shape_cast %126 : vector<8x8xbf16> to vector<1x8x8xbf16>
      tpu.vector_store %arg9[%c1_87, %c0_88, %c0_89], %129 {strides = array<i32>} : memref<4x8x8xbf16, #tpu.memory_space<vmem>>, vector<1x8x8xbf16>,
      %130 = vector.extract_strided_slice %125 {offsets = [0, 8], sizes = [8, 8], strides = [1, 1]} : vector<8x16xbf16> to vector<8x8xbf16>
      %c1_90 = arith.constant 1 : index
      %c0_91 = arith.constant 0 : index
      %c0_92 = arith.constant 0 : index
      %131 = vector.load %arg10[%c1_90, %c0_91, %c0_92] : memref<4x8x8xbf16, #tpu.memory_space<vmem>>, vector<1x8x8xbf16>
      %132 = vector.shape_cast %131 : vector<1x8x8xbf16> to vector<8x8xbf16>
      %133 = vector.shape_cast %130 : vector<8x8xbf16> to vector<1x8x8xbf16>
      tpu.vector_store %arg10[%c1_90, %c0_91, %c0_92], %133 {strides = array<i32>} : memref<4x8x8xbf16, #tpu.memory_space<vmem>>, vector<1x8x8xbf16>,
      %c2_93 = arith.constant 2 : index
      %c0_94 = arith.constant 0 : index
      %c0_95 = arith.constant 0 : index
      %134 = vector.load %arg5[%c2_93, %c0_94, %c0_95] : memref<4x32x16xbf16, #tpu.memory_space<vmem>>, vector<1x32x16xbf16>
      %135 = vector.shape_cast %134 : vector<1x32x16xbf16> to vector<32x16xbf16>
      %cst_96 = arith.constant dense<0.000000e+00> : vector<8x16xf32>
      %136 = tpu.matmul %109, %135, %cst_96 {dimension_numbers = #tpu.dot_dimension_numbers<[1], [0], [0], [1], [0, 0, 1, 1], [], []>} : vector<8x32xbf16>, vector<32x16xbf16>, vector<8x16xf32> -> vector<8x16xf32>
      %137 = arith.truncf %136 : vector<8x16xf32> to vector<8x16xbf16>
      %138 = vector.extract_strided_slice %137 {offsets = [0, 0], sizes = [8, 8], strides = [1, 1]} : vector<8x16xbf16> to vector<8x8xbf16>
      %c2_97 = arith.constant 2 : index
      %c0_98 = arith.constant 0 : index
      %c0_99 = arith.constant 0 : index
      %139 = vector.load %arg9[%c2_97, %c0_98, %c0_99] : memref<4x8x8xbf16, #tpu.memory_space<vmem>>, vector<1x8x8xbf16>
      %140 = vector.shape_cast %139 : vector<1x8x8xbf16> to vector<8x8xbf16>
      %141 = vector.shape_cast %138 : vector<8x8xbf16> to vector<1x8x8xbf16>
      tpu.vector_store %arg9[%c2_97, %c0_98, %c0_99], %141 {strides = array<i32>} : memref<4x8x8xbf16, #tpu.memory_space<vmem>>, vector<1x8x8xbf16>,
      %142 = vector.extract_strided_slice %137 {offsets = [0, 8], sizes = [8, 8], strides = [1, 1]} : vector<8x16xbf16> to vector<8x8xbf16>
      %c2_100 = arith.constant 2 : index
      %c0_101 = arith.constant 0 : index
      %c0_102 = arith.constant 0 : index
      %143 = vector.load %arg10[%c2_100, %c0_101, %c0_102] : memref<4x8x8xbf16, #tpu.memory_space<vmem>>, vector<1x8x8xbf16>
      %144 = vector.shape_cast %143 : vector<1x8x8xbf16> to vector<8x8xbf16>
      %145 = vector.shape_cast %142 : vector<8x8xbf16> to vector<1x8x8xbf16>
      tpu.vector_store %arg10[%c2_100, %c0_101, %c0_102], %145 {strides = array<i32>} : memref<4x8x8xbf16, #tpu.memory_space<vmem>>, vector<1x8x8xbf16>,
      %c3_103 = arith.constant 3 : index
      %c0_104 = arith.constant 0 : index
      %c0_105 = arith.constant 0 : index
      %146 = vector.load %arg5[%c3_103, %c0_104, %c0_105] : memref<4x32x16xbf16, #tpu.memory_space<vmem>>, vector<1x32x16xbf16>
      %147 = vector.shape_cast %146 : vector<1x32x16xbf16> to vector<32x16xbf16>
      %cst_106 = arith.constant dense<0.000000e+00> : vector<8x16xf32>
      %148 = tpu.matmul %109, %147, %cst_106 {dimension_numbers = #tpu.dot_dimension_numbers<[1], [0], [0], [1], [0, 0, 1, 1], [], []>} : vector<8x32xbf16>, vector<32x16xbf16>, vector<8x16xf32> -> vector<8x16xf32>
      %149 = arith.truncf %148 : vector<8x16xf32> to vector<8x16xbf16>
      %150 = vector.extract_strided_slice %149 {offsets = [0, 0], sizes = [8, 8], strides = [1, 1]} : vector<8x16xbf16> to vector<8x8xbf16>
      %c3_107 = arith.constant 3 : index
      %c0_108 = arith.constant 0 : index
      %c0_109 = arith.constant 0 : index
      %151 = vector.load %arg9[%c3_107, %c0_108, %c0_109] : memref<4x8x8xbf16, #tpu.memory_space<vmem>>, vector<1x8x8xbf16>
      %152 = vector.shape_cast %151 : vector<1x8x8xbf16> to vector<8x8xbf16>
      %153 = vector.shape_cast %150 : vector<8x8xbf16> to vector<1x8x8xbf16>
      tpu.vector_store %arg9[%c3_107, %c0_108, %c0_109], %153 {strides = array<i32>} : memref<4x8x8xbf16, #tpu.memory_space<vmem>>, vector<1x8x8xbf16>,
      %154 = vector.extract_strided_slice %149 {offsets = [0, 8], sizes = [8, 8], strides = [1, 1]} : vector<8x16xbf16> to vector<8x8xbf16>
      %c3_110 = arith.constant 3 : index
      %c0_111 = arith.constant 0 : index
      %c0_112 = arith.constant 0 : index
      %155 = vector.load %arg10[%c3_110, %c0_111, %c0_112] : memref<4x8x8xbf16, #tpu.memory_space<vmem>>, vector<1x8x8xbf16>
      %156 = vector.shape_cast %155 : vector<1x8x8xbf16> to vector<8x8xbf16>
      %157 = vector.shape_cast %154 : vector<8x8xbf16> to vector<1x8x8xbf16>
      tpu.vector_store %arg10[%c3_110, %c0_111, %c0_112], %157 {strides = array<i32>} : memref<4x8x8xbf16, #tpu.memory_space<vmem>>, vector<1x8x8xbf16>,
    } else {
    }
    %c0 = arith.constant 0 : index
    %c0_1 = arith.constant 0 : index
    %c0_2 = arith.constant 0 : index
    %3 = vector.load %arg2[%c0, %c0_1, %c0_2] : memref<1x8x32xbf16, #tpu.memory_space<vmem>>, vector<1x8x32xbf16>
    %4 = vector.shape_cast %3 : vector<1x8x32xbf16> to vector<8x32xbf16>
    %c0_3 = arith.constant 0 : index
    %c0_4 = arith.constant 0 : index
    %c0_5 = arith.constant 0 : index
    %5 = vector.load %arg4[%c0_3, %c0_4, %c0_5] : memref<4x32x8xbf16, #tpu.memory_space<vmem>>, vector<1x32x8xbf16>
    %6 = vector.shape_cast %5 : vector<1x32x8xbf16> to vector<32x8xbf16>
    %cst = arith.constant dense<0.000000e+00> : vector<8x8xf32>
    %7 = tpu.matmul %4, %6, %cst {dimension_numbers = #tpu.dot_dimension_numbers<[1], [0], [0], [1], [0, 0, 1, 1], [], []>} : vector<8x32xbf16>, vector<32x8xbf16>, vector<8x8xf32> -> vector<8x8xf32>
    %8 = arith.truncf %7 : vector<8x8xf32> to vector<8x8xbf16>
    %c0_6 = arith.constant 0 : index
    %c0_7 = arith.constant 0 : index
    %c0_8 = arith.constant 0 : index
    %9 = vector.load %arg9[%c0_6, %c0_7, %c0_8] : memref<4x8x8xbf16, #tpu.memory_space<vmem>>, vector<1x8x8xbf16>
    %10 = vector.shape_cast %9 : vector<1x8x8xbf16> to vector<8x8xbf16>
    %cst_9 = arith.constant dense<0.000000e+00> : vector<8x8xf32>
    %11 = tpu.matmul %8, %10, %cst_9 {dimension_numbers = #tpu.dot_dimension_numbers<[1], [1], [0], [0], [0, 0, 1, 0], [], []>} : vector<8x8xbf16>, vector<8x8xbf16>, vector<8x8xf32> -> vector<8x8xf32>
    %cst_10 = arith.constant dense<0xFF800000> : vector<8xf32>
    %12 = vector.multi_reduction <maximumf>, %11, %cst_10 [1] : vector<8x8xf32> to vector<8xf32>
    %13 = vector.shape_cast %12 : vector<8xf32> to vector<8x1xf32>
    %14 = vector.broadcast %13 : vector<8x1xf32> to vector<8x8xf32>
    %15 = arith.subf %11, %14 : vector<8x8xf32>
    %16 = math.exp %15 : vector<8x8xf32>
    %cst_11 = arith.constant dense<0.000000e+00> : vector<8xf32>
    %17 = vector.multi_reduction <add>, %16, %cst_11 [1] : vector<8x8xf32> to vector<8xf32>
    %18 = vector.shape_cast %17 : vector<8xf32> to vector<8x1xf32>
    %19 = arith.truncf %16 : vector<8x8xf32> to vector<8x8xbf16>
    %c0_12 = arith.constant 0 : index
    %c0_13 = arith.constant 0 : index
    %c0_14 = arith.constant 0 : index
    %20 = vector.load %arg10[%c0_12, %c0_13, %c0_14] : memref<4x8x8xbf16, #tpu.memory_space<vmem>>, vector<1x8x8xbf16>
    %21 = vector.shape_cast %20 : vector<1x8x8xbf16> to vector<8x8xbf16>
    %cst_15 = arith.constant dense<0.000000e+00> : vector<8x8xf32>
    %22 = tpu.matmul %19, %21, %cst_15 {dimension_numbers = #tpu.dot_dimension_numbers<[1], [0], [0], [1], [0, 0, 1, 1], [], []>} : vector<8x8xbf16>, vector<8x8xbf16>, vector<8x8xf32> -> vector<8x8xf32>
    %23 = tpu.reciprocal %18 {approx = true} : vector<8x1xf32> -> vector<8x1xf32>
    %24 = vector.broadcast %23 : vector<8x1xf32> to vector<8x8xf32>
    %25 = arith.mulf %22, %24 : vector<8x8xf32>
    %26 = arith.truncf %25 : vector<8x8xf32> to vector<8x8xbf16>
    %c0_16 = arith.constant 0 : index
    %c0_17 = arith.constant 0 : index
    %27 = vector.load %arg11[%c0_16, %c0_17] : memref<8x32xbf16, #tpu.memory_space<vmem>>, vector<8x8xbf16>
    tpu.vector_store %arg11[%c0_16, %c0_17], %26 {strides = array<i32>} : memref<8x32xbf16, #tpu.memory_space<vmem>>, vector<8x8xbf16>,
    %c1 = arith.constant 1 : index
    %c0_18 = arith.constant 0 : index
    %c0_19 = arith.constant 0 : index
    %28 = vector.load %arg4[%c1, %c0_18, %c0_19] : memref<4x32x8xbf16, #tpu.memory_space<vmem>>, vector<1x32x8xbf16>
    %29 = vector.shape_cast %28 : vector<1x32x8xbf16> to vector<32x8xbf16>
    %cst_20 = arith.constant dense<0.000000e+00> : vector<8x8xf32>
    %30 = tpu.matmul %4, %29, %cst_20 {dimension_numbers = #tpu.dot_dimension_numbers<[1], [0], [0], [1], [0, 0, 1, 1], [], []>} : vector<8x32xbf16>, vector<32x8xbf16>, vector<8x8xf32> -> vector<8x8xf32>
    %31 = arith.truncf %30 : vector<8x8xf32> to vector<8x8xbf16>
    %c1_21 = arith.constant 1 : index
    %c0_22 = arith.constant 0 : index
    %c0_23 = arith.constant 0 : index
    %32 = vector.load %arg9[%c1_21, %c0_22, %c0_23] : memref<4x8x8xbf16, #tpu.memory_space<vmem>>, vector<1x8x8xbf16>
    %33 = vector.shape_cast %32 : vector<1x8x8xbf16> to vector<8x8xbf16>
    %cst_24 = arith.constant dense<0.000000e+00> : vector<8x8xf32>
    %34 = tpu.matmul %31, %33, %cst_24 {dimension_numbers = #tpu.dot_dimension_numbers<[1], [1], [0], [0], [0, 0, 1, 0], [], []>} : vector<8x8xbf16>, vector<8x8xbf16>, vector<8x8xf32> -> vector<8x8xf32>
    %cst_25 = arith.constant dense<0xFF800000> : vector<8xf32>
    %35 = vector.multi_reduction <maximumf>, %34, %cst_25 [1] : vector<8x8xf32> to vector<8xf32>
    %36 = vector.shape_cast %35 : vector<8xf32> to vector<8x1xf32>
    %37 = vector.broadcast %36 : vector<8x1xf32> to vector<8x8xf32>
    %38 = arith.subf %34, %37 : vector<8x8xf32>
    %39 = math.exp %38 : vector<8x8xf32>
    %cst_26 = arith.constant dense<0.000000e+00> : vector<8xf32>
    %40 = vector.multi_reduction <add>, %39, %cst_26 [1] : vector<8x8xf32> to vector<8xf32>
    %41 = vector.shape_cast %40 : vector<8xf32> to vector<8x1xf32>
    %42 = arith.truncf %39 : vector<8x8xf32> to vector<8x8xbf16>
    %c1_27 = arith.constant 1 : index
    %c0_28 = arith.constant 0 : index
    %c0_29 = arith.constant 0 : index
    %43 = vector.load %arg10[%c1_27, %c0_28, %c0_29] : memref<4x8x8xbf16, #tpu.memory_space<vmem>>, vector<1x8x8xbf16>
    %44 = vector.shape_cast %43 : vector<1x8x8xbf16> to vector<8x8xbf16>
    %cst_30 = arith.constant dense<0.000000e+00> : vector<8x8xf32>
    %45 = tpu.matmul %42, %44, %cst_30 {dimension_numbers = #tpu.dot_dimension_numbers<[1], [0], [0], [1], [0, 0, 1, 1], [], []>} : vector<8x8xbf16>, vector<8x8xbf16>, vector<8x8xf32> -> vector<8x8xf32>
    %46 = tpu.reciprocal %41 {approx = true} : vector<8x1xf32> -> vector<8x1xf32>
    %47 = vector.broadcast %46 : vector<8x1xf32> to vector<8x8xf32>
    %48 = arith.mulf %45, %47 : vector<8x8xf32>
    %49 = arith.truncf %48 : vector<8x8xf32> to vector<8x8xbf16>
    %c0_31 = arith.constant 0 : index
    %c8 = arith.constant 8 : index
    %50 = vector.load %arg11[%c0_31, %c8] : memref<8x32xbf16, #tpu.memory_space<vmem>>, vector<8x8xbf16>
    tpu.vector_store %arg11[%c0_31, %c8], %49 {strides = array<i32>} : memref<8x32xbf16, #tpu.memory_space<vmem>>, vector<8x8xbf16>,
    %c2 = arith.constant 2 : index
    %c0_32 = arith.constant 0 : index
    %c0_33 = arith.constant 0 : index
    %51 = vector.load %arg4[%c2, %c0_32, %c0_33] : memref<4x32x8xbf16, #tpu.memory_space<vmem>>, vector<1x32x8xbf16>
    %52 = vector.shape_cast %51 : vector<1x32x8xbf16> to vector<32x8xbf16>
    %cst_34 = arith.constant dense<0.000000e+00> : vector<8x8xf32>
    %53 = tpu.matmul %4, %52, %cst_34 {dimension_numbers = #tpu.dot_dimension_numbers<[1], [0], [0], [1], [0, 0, 1, 1], [], []>} : vector<8x32xbf16>, vector<32x8xbf16>, vector<8x8xf32> -> vector<8x8xf32>
    %54 = arith.truncf %53 : vector<8x8xf32> to vector<8x8xbf16>
    %c2_35 = arith.constant 2 : index
    %c0_36 = arith.constant 0 : index
    %c0_37 = arith.constant 0 : index
    %55 = vector.load %arg9[%c2_35, %c0_36, %c0_37] : memref<4x8x8xbf16, #tpu.memory_space<vmem>>, vector<1x8x8xbf16>
    %56 = vector.shape_cast %55 : vector<1x8x8xbf16> to vector<8x8xbf16>
    %cst_38 = arith.constant dense<0.000000e+00> : vector<8x8xf32>
    %57 = tpu.matmul %54, %56, %cst_38 {dimension_numbers = #tpu.dot_dimension_numbers<[1], [1], [0], [0], [0, 0, 1, 0], [], []>} : vector<8x8xbf16>, vector<8x8xbf16>, vector<8x8xf32> -> vector<8x8xf32>
    %cst_39 = arith.constant dense<0xFF800000> : vector<8xf32>
    %58 = vector.multi_reduction <maximumf>, %57, %cst_39 [1] : vector<8x8xf32> to vector<8xf32>
    %59 = vector.shape_cast %58 : vector<8xf32> to vector<8x1xf32>
    %60 = vector.broadcast %59 : vector<8x1xf32> to vector<8x8xf32>
    %61 = arith.subf %57, %60 : vector<8x8xf32>
    %62 = math.exp %61 : vector<8x8xf32>
    %cst_40 = arith.constant dense<0.000000e+00> : vector<8xf32>
    %63 = vector.multi_reduction <add>, %62, %cst_40 [1] : vector<8x8xf32> to vector<8xf32>
    %64 = vector.shape_cast %63 : vector<8xf32> to vector<8x1xf32>
    %65 = arith.truncf %62 : vector<8x8xf32> to vector<8x8xbf16>
    %c2_41 = arith.constant 2 : index
    %c0_42 = arith.constant 0 : index
    %c0_43 = arith.constant 0 : index
    %66 = vector.load %arg10[%c2_41, %c0_42, %c0_43] : memref<4x8x8xbf16, #tpu.memory_space<vmem>>, vector<1x8x8xbf16>
    %67 = vector.shape_cast %66 : vector<1x8x8xbf16> to vector<8x8xbf16>
    %cst_44 = arith.constant dense<0.000000e+00> : vector<8x8xf32>
    %68 = tpu.matmul %65, %67, %cst_44 {dimension_numbers = #tpu.dot_dimension_numbers<[1], [0], [0], [1], [0, 0, 1, 1], [], []>} : vector<8x8xbf16>, vector<8x8xbf16>, vector<8x8xf32> -> vector<8x8xf32>
    %69 = tpu.reciprocal %64 {approx = true} : vector<8x1xf32> -> vector<8x1xf32>
    %70 = vector.broadcast %69 : vector<8x1xf32> to vector<8x8xf32>
    %71 = arith.mulf %68, %70 : vector<8x8xf32>
    %72 = arith.truncf %71 : vector<8x8xf32> to vector<8x8xbf16>
    %c0_45 = arith.constant 0 : index
    %c16 = arith.constant 16 : index
    %73 = vector.load %arg11[%c0_45, %c16] : memref<8x32xbf16, #tpu.memory_space<vmem>>, vector<8x8xbf16>
    tpu.vector_store %arg11[%c0_45, %c16], %72 {strides = array<i32>} : memref<8x32xbf16, #tpu.memory_space<vmem>>, vector<8x8xbf16>,
    %c3 = arith.constant 3 : index
    %c0_46 = arith.constant 0 : index
    %c0_47 = arith.constant 0 : index
    %74 = vector.load %arg4[%c3, %c0_46, %c0_47] : memref<4x32x8xbf16, #tpu.memory_space<vmem>>, vector<1x32x8xbf16>
    %75 = vector.shape_cast %74 : vector<1x32x8xbf16> to vector<32x8xbf16>
    %cst_48 = arith.constant dense<0.000000e+00> : vector<8x8xf32>
    %76 = tpu.matmul %4, %75, %cst_48 {dimension_numbers = #tpu.dot_dimension_numbers<[1], [0], [0], [1], [0, 0, 1, 1], [], []>} : vector<8x32xbf16>, vector<32x8xbf16>, vector<8x8xf32> -> vector<8x8xf32>
    %77 = arith.truncf %76 : vector<8x8xf32> to vector<8x8xbf16>
    %c3_49 = arith.constant 3 : index
    %c0_50 = arith.constant 0 : index
    %c0_51 = arith.constant 0 : index
    %78 = vector.load %arg9[%c3_49, %c0_50, %c0_51] : memref<4x8x8xbf16, #tpu.memory_space<vmem>>, vector<1x8x8xbf16>
    %79 = vector.shape_cast %78 : vector<1x8x8xbf16> to vector<8x8xbf16>
    %cst_52 = arith.constant dense<0.000000e+00> : vector<8x8xf32>
    %80 = tpu.matmul %77, %79, %cst_52 {dimension_numbers = #tpu.dot_dimension_numbers<[1], [1], [0], [0], [0, 0, 1, 0], [], []>} : vector<8x8xbf16>, vector<8x8xbf16>, vector<8x8xf32> -> vector<8x8xf32>
    %cst_53 = arith.constant dense<0xFF800000> : vector<8xf32>
    %81 = vector.multi_reduction <maximumf>, %80, %cst_53 [1] : vector<8x8xf32> to vector<8xf32>
    %82 = vector.shape_cast %81 : vector<8xf32> to vector<8x1xf32>
    %83 = vector.broadcast %82 : vector<8x1xf32> to vector<8x8xf32>
    %84 = arith.subf %80, %83 : vector<8x8xf32>
    %85 = math.exp %84 : vector<8x8xf32>
    %cst_54 = arith.constant dense<0.000000e+00> : vector<8xf32>
    %86 = vector.multi_reduction <add>, %85, %cst_54 [1] : vector<8x8xf32> to vector<8xf32>
    %87 = vector.shape_cast %86 : vector<8xf32> to vector<8x1xf32>
    %88 = arith.truncf %85 : vector<8x8xf32> to vector<8x8xbf16>
    %c3_55 = arith.constant 3 : index
    %c0_56 = arith.constant 0 : index
    %c0_57 = arith.constant 0 : index
    %89 = vector.load %arg10[%c3_55, %c0_56, %c0_57] : memref<4x8x8xbf16, #tpu.memory_space<vmem>>, vector<1x8x8xbf16>
    %90 = vector.shape_cast %89 : vector<1x8x8xbf16> to vector<8x8xbf16>
    %cst_58 = arith.constant dense<0.000000e+00> : vector<8x8xf32>
    %91 = tpu.matmul %88, %90, %cst_58 {dimension_numbers = #tpu.dot_dimension_numbers<[1], [0], [0], [1], [0, 0, 1, 1], [], []>} : vector<8x8xbf16>, vector<8x8xbf16>, vector<8x8xf32> -> vector<8x8xf32>
    %92 = tpu.reciprocal %87 {approx = true} : vector<8x1xf32> -> vector<8x1xf32>
    %93 = vector.broadcast %92 : vector<8x1xf32> to vector<8x8xf32>
    %94 = arith.mulf %91, %93 : vector<8x8xf32>
    %95 = arith.truncf %94 : vector<8x8xf32> to vector<8x8xbf16>
    %c0_59 = arith.constant 0 : index
    %c24 = arith.constant 24 : index
    %96 = vector.load %arg11[%c0_59, %c24] : memref<8x32xbf16, #tpu.memory_space<vmem>>, vector<8x8xbf16>
    tpu.vector_store %arg11[%c0_59, %c24], %95 {strides = array<i32>} : memref<8x32xbf16, #tpu.memory_space<vmem>>, vector<8x8xbf16>,
    %c0_60 = arith.constant 0 : index
    %c0_61 = arith.constant 0 : index
    %97 = vector.load %arg11[%c0_60, %c0_61] : memref<8x32xbf16, #tpu.memory_space<vmem>>, vector<8x32xbf16>
    %c0_62 = arith.constant 0 : index
    %c0_63 = arith.constant 0 : index
    %98 = vector.load %arg6[%c0_62, %c0_63] : memref<32x32xbf16, #tpu.memory_space<vmem>>, vector<32x32xbf16>
    %cst_64 = arith.constant dense<0.000000e+00> : vector<8x32xf32>
    %99 = tpu.matmul %97, %98, %cst_64 {dimension_numbers = #tpu.dot_dimension_numbers<[1], [0], [0], [1], [0, 0, 1, 1], [], []>} : vector<8x32xbf16>, vector<32x32xbf16>, vector<8x32xf32> -> vector<8x32xf32>
    %c0_65 = arith.constant 0 : index
    %c0_66 = arith.constant 0 : index
    %100 = vector.load %arg7[%c0_65, %c0_66] : memref<1x32xf32, #tpu.memory_space<vmem>>, vector<1x32xf32>
    %101 = vector.shape_cast %100 : vector<1x32xf32> to vector<32xf32>
    %102 = vector.shape_cast %101 : vector<32xf32> to vector<1x32xf32>
    %103 = vector.broadcast %102 : vector<1x32xf32> to vector<8x32xf32>
    %104 = arith.addf %99, %103 : vector<8x32xf32>
    %c0_67 = arith.constant 0 : index
    %c0_68 = arith.constant 0 : index
    %c0_69 = arith.constant 0 : index
    %105 = vector.load %arg8[%c0_67, %c0_68, %c0_69] : memref<1x8x32xf32, #tpu.memory_space<vmem>>, vector<1x8x32xf32>
    %106 = vector.shape_cast %105 : vector<1x8x32xf32> to vector<8x32xf32>
    %107 = vector.shape_cast %104 : vector<8x32xf32> to vector<1x8x32xf32>
    tpu.vector_store %arg8[%c0_67, %c0_68, %c0_69], %107 {strides = array<i32>} : memref<1x8x32xf32, #tpu.memory_space<vmem>>, vector<1x8x32xf32>,
    return
  }
  func.func @transform_0(%arg0: i32, %arg1: i32) -> (i32, i32, i32) {
    %c0_i32 = arith.constant 0 : i32
    %c0_i32_0 = arith.constant 0 : i32
    return %arg0, %arg1, %c0_i32 : i32, i32, i32
  }
  func.func @transform_1(%arg0: i32, %arg1: i32) -> (i32, i32, i32) {
    %c0_i32 = arith.constant 0 : i32
    %c0_i32_0 = arith.constant 0 : i32
    %c0_i32_1 = arith.constant 0 : i32
    return %arg0, %c0_i32, %c0_i32_0 : i32, i32, i32
  }
  func.func @transform_2(%arg0: i32, %arg1: i32) -> (i32, i32, i32) {
    %c0_i32 = arith.constant 0 : i32
    %c0_i32_0 = arith.constant 0 : i32
    %c0_i32_1 = arith.constant 0 : i32
    %c0_i32_2 = arith.constant 0 : i32
    return %c0_i32, %c0_i32_0, %c0_i32_1 : i32, i32, i32
  }
  func.func @transform_3(%arg0: i32, %arg1: i32) -> (i32, i32, i32) {
    %c0_i32 = arith.constant 0 : i32
    %c0_i32_0 = arith.constant 0 : i32
    %c0_i32_1 = arith.constant 0 : i32
    %c0_i32_2 = arith.constant 0 : i32
    return %c0_i32, %c0_i32_0, %c0_i32_1 : i32, i32, i32
  }
  func.func @transform_4(%arg0: i32, %arg1: i32) -> (i32, i32) {
    %c0_i32 = arith.constant 0 : i32
    %c0_i32_0 = arith.constant 0 : i32
    %c0_i32_1 = arith.constant 0 : i32
    return %c0_i32, %c0_i32_0 : i32, i32
  }
  func.func @transform_5(%arg0: i32, %arg1: i32) -> (i32, i32) {
    %c0_i32 = arith.constant 0 : i32
    %c0_i32_0 = arith.constant 0 : i32
    %c0_i32_1 = arith.constant 0 : i32
    return %c0_i32, %c0_i32_0 : i32, i32
  }
  func.func @transform_6(%arg0: i32, %arg1: i32) -> (i32, i32, i32) {
    %c0_i32 = arith.constant 0 : i32
    %c0_i32_0 = arith.constant 0 : i32
    return %arg0, %arg1, %c0_i32 : i32, i32, i32
  }
}

</mosaic_0001>

<bundles_post_ra>
// kernel: tpu_custom_call.1
= control target key start
LH: loop header
LB: loop body
LE: loop exit
PB: predicated region body
PF: predicated region fallthrough
CT: control target
= control target key end

     0   :  { %11 = vsyncpa [#allocation6], 0  ;;  %s1511_s0 = inlined_call_operand.vmem [shape: bf16[2,8,32], index: 0, kind: input, shape index: {}]   ;;  %s1512_s1 = inlined_call_operand.vmem [shape: bf16[2,8,32], index: 1, kind: input, shape index: {}]   ;;  %s1513_s2 = inlined_call_operand.vmem [shape: bf16[4,32,8], index: 2, kind: input, shape index: {}]   ;;  %s1514_s3 = inlined_call_operand.vmem [shape: bf16[4,32,16], index: 3, kind: input, shape index: {}]   ;;  %s1515_s4 = inlined_call_operand.vmem [shape: bf16[32,32], index: 4, kind: input, shape index: {}]   ;;  %s1516_s5 = inlined_call_operand.vmem [shape: f32[1,32], index: 5, kind: input, shape index: {}]   ;;  %s1517_s6 = inlined_call_operand.hbm [shape: f32[2,8,32], index: 6, kind: output, shape index: {}]  }
   0x1   :  { %13 = vsyncpa [#allocation6 + $0x1], 0  ;;  %s1297_s21 = smov 0   ;;  %s1299_s22 = smov 0  }
   0x2   :  { %s1301_s23 = smov 0   ;;  %s1303_s24 = smov 0  }
   0x3   :  { %s1305_s25 = smov 0   ;;  %s1307_s26 = smov 0  }
   0x4 LB: > { %s959_s27 = sadd.s32 4294967295, %s1256_s26   ;;  %s960_s28 = sadd.s32 4294967294, %s1256_s26   ;;  %s1256_s26 = sphi %s1307_s26, %s19_s26   ;;  %s1252_s25 = sphi %s1305_s25, %s1524_s25   ;;  %s1248_s24 = sphi %s1303_s24, %s1523_s24   ;;  %s1244_s23 = sphi %s1301_s23, %s1522_s23   ;;  %s1240_s22 = sphi %s1299_s22, %s1521_s22   ;;  %s1236_s21 = sphi %s1297_s21, %s1520_s21  }
   0x5   : > { %s31_s29 = sadd.s32 1, %s1252_s25  ;;  %s178_s30 = sadd.s32 1, %s1244_s23 }
   0x6   : > { %p33_p0 = scmp.ge.s32.totalorder %s31_s29, 2  ;;  %p188_p1 = scmp.ne.s32.totalorder %s1244_s23, %s1240_s22 }
   0x7   : > { %p189_p2 = scmp.eq.s32.totalorder %s959_s27, 1  ;;  %p194_p3 = scmp.ne.s32.totalorder %s1240_s22, %s1236_s21 }
   0x8   : > { %s1526_s29 = smov (%p33_p0, %s31_s29), 0  ;;  %p195_p5 = scmp.eq.s32.totalorder %s960_s28, 1 }
   0x9   : > { %p1337_p4 = por %p189_p2, %p188_p1  ;;  %s173_s8 = ssub.s32 %s1252_s25, %s1526_s29 }
   0xa   : > { %p963_p6 = scmp.ge.s32.totalorder %s1256_s26, 1  ;;  %p176_p7 = scmp.eq.s32.totalorder %s173_s8, 0 }
   0xb   : > { %p1344_p8 = por %p195_p5, %p194_p3  ;;  %p242_p9 = scmp.lt.s32.totalorder %s1256_s26, 3 }
   0xc   : > { %s1350_s10 = scalar_select %p176_p7, %s1244_s23, %s178_s30  }
   0xd   : > { %p243_p10 = pnand %p963_p6, %p242_p9 }
   0xe   : > { %p278_p11 = scmp.lt.s32.totalorder (!%p243_p10), %s1248_s24, 1  ;;  %s1258_s11 = smov (!%p243_p10), 120  }
   0xf   : > { %246 = sbr.rel (%p243_p10) target bundleno = 1242 (0x4da), region = 44  ;;  %s1081_s18 = sshll.u32 (!%p243_p10), %s1248_s24, 3 }
  0x10   : > { %s871_s28 = scalar_lea.hbm (!%p243_p10), %s1517_s6, %s1081_s18 }
  0x11   : > { %s875_s13 = sshll.u32 (!%p243_p10), %s871_s28, 4  ;;  %s876_s13 = int_to_ptr.hbm [resolvable:$true] %s875_s13 }
  0x12   : > { %s1192_s14 = sshra.s32 (!%p243_p10), %s876_s13, 4  ;;  %s1193_s14 = int_to_ptr.hbm [resolvable:$true] %s1192_s14 }
  0x13   : > { %s1194_s15 = scalar_lea.hbm (!%p243_p10), %s1193_s14, 8  ;;  %p1199_p1 = scmp.lt.s32.totalorder (!%p243_p10), %s1193_s14, %s1517_s6 }
  0x14   : > { %v1085_v0 = vld [vmem:[%s1514_s3 + $0x8] sm:$0xff]  ;;  %v1087_v1 = vld [vmem:[%s1514_s3 + $0x18] sm:$0xff]  ;;  %v1084_v3 = vld [vmem:[%s1514_s3] sm:$0xff]  ;;  %s279_s27 = scalar_select %p278_p11, %s1248_s24, 1  ;;  %vm311_vm0 = vcmask 261120   ;;  %vm329_vm1 = vcmask 60416  }
  0x15   : > { %v1091_v2 = vld [vmem:[%s1514_s3 + $0x38] sm:$0xff]  ;;  %321 = vmatpush.bf16.msra.mxu0 %v1085_v0  ;;  %359 = vmatpush.bf16.msra.mxu1 %v1087_v1  ;;  %v1086_v4 = vld [vmem:[%s1514_s3 + $0x10] sm:$0xff]  ;;  %v1093_v6 = vld [vmem:[%s1513_s2 + $0x8] sm:$0xff]  ;;  %vm489_vm2 = vcmask 64512   ;;  %vm523_vm3 = vcmask 1043456   ;;  %vm635_vm4 = vcmask 126016   ;;  %p1195_p12 = scmp.ne.s32.totalorder %s1193_s14, %s1194_s15 }
  0x16   : > { %437 = vmatpush.bf16.msra.mxu3 %v1091_v2  ;;  %v1090_v5 = vld [vmem:[%s1514_s3 + $0x30] sm:$0xff]  ;;  %s965_s12 = sshll.u32 %s279_s27, 2  ;;  %v1095_v7 = vld [vmem:[%s1513_s2 + $0x18] sm:$0xff]  ;;  %v1092_v9 = vld [vmem:[%s1513_s2] sm:$0xff]  ;;  %vm727_vm5 = vcmask 191616   ;;  %vm819_vm6 = vcmask 257216  }
  0x17   : > { %s288_s17 = scalar_lea.vmem %s1512_s1, %s965_s12  ;;  %v1094_v10 = vld [vmem:[%s1513_s2 + $0x10] sm:$0xff]  ;;  %s284_s8 = scalar_lea.vmem %s1511_s0, %s965_s12  ;;  %v1089_v31 = vld [vmem:[%s1514_s3 + $0x28] sm:$0xff]  ;;  %v1088_v32 = vld [vmem:[%s1514_s3 + $0x20] sm:$0xff] }
  0x18   : > { %v294_v8 = vld [vmem:[%s288_s17] sm:$0xf]  ;;  %398 = vmatpush.bf16.msra.mxu2 %v1089_v31  ;;  %v1097_v45 = vld [vmem:[%s1513_s2 + $0x28] sm:$0xff]  ;;  %v1099_v47 = vld [vmem:[%s1513_s2 + $0x38] sm:$0xff]  ;;  %s1261_s12 = smov 24   ;;  %s275_s17 = sand.u32 1, %s1240_s22  }
  0x19   : > { %322 = vmatpush.bf16.msra.mxu0 %v1084_v3  ;;  %360 = vmatpush.bf16.msra.mxu1 %v1086_v4  ;;  %v1393_v11 = vld [vmem:[%s284_s8] sm:$0xf]  ;;  %v1098_v49 = vld [vmem:[%s1513_s2 + $0x30] sm:$0xff]  ;;  %s1259_s8 = smov 8   ;;  %s964_s19 = sshll.u32 %s275_s17, 3 }
  0x1a   : > { %438 = vmatpush.bf16.msra.mxu3 %v1090_v5  ;;  %v1096_v46 = vld [vmem:[%s1513_s2 + $0x20] sm:$0xff]  ;;  %s860_s24 = scalar_lea.sflag [#allocation6], %s275_s17  ;;  %p1196_p13 = pnand %p1195_p12, %p1337_p4 }
  0x1c   : > { %975 = vmatmul.msk.bf16.vlgmr.msra.gmra.mxu0 %vm311_vm0, %v294_v8  ;;  %988 = vmatmul.msk.bf16.vlgmr.msra.gmra.mxu1 %vm311_vm0, %v294_v8  ;;  %p1197_p0 = pneg %p1196_p13 }
  0x1d   : > { %480 = vmatpush.bf16.msrb.mxu0 %v1093_v6  ;;  %1014 = vmatmul.msk.bf16.vlgmr.msra.gmra.mxu3 %vm311_vm0, %v294_v8 }
  0x1e   : > { %568 = vmatpush.bf16.msrb.mxu3 %v1095_v7  ;;  %399 = vmatpush.bf16.msra.mxu2 %v1088_v32 }
  0x21   : > { %481 = vmatpush.bf16.msrb.mxu0 %v1092_v9  ;;  %1001 = vmatmul.msk.bf16.vlgmr.msra.gmra.mxu2 %vm311_vm0, %v294_v8 }
  0x22   : > { %569 = vmatpush.bf16.msrb.mxu3 %v1094_v10 }
  0x2c   : > { %1023 = vmatmul.msk.bf16.vlgmr.msrb.gmra.mxu0 %vm311_vm0, %v1393_v11 }
  0x2d   : > { %1038 = vmatmul.msk.bf16.vlgmr.msrb.gmra.mxu3 %vm311_vm0, %v1393_v11 }
  0x99   : > { %v324_v12 = vpop.f32.mrf.mxu0  ;;  %v362_v13 = vpop.f32.mrf.mxu1 }
  0x9a   : > { %v328_v14 = vpack.c.bf16 %v324_v12, %v324_v12  ;;  %v366_v15 = vpack.c.bf16 %v362_v13, %v362_v13 }
  0x9c   : > { %330 = vst.msk [vmem:[#allocation2] sm:$0xf] %vm329_vm1, %v328_v14  ;;  %332 = vrot.lane.b32.xlu1 %v328_v14, %s1258_s11 }
  0x9d   : > { %368 = vst.msk [vmem:[#allocation2 + $0x4] sm:$0xf] %vm329_vm1, %v366_v15 }
  0xa0   : > { %v440_v16 = vpop.f32.mrf.mxu3 }
  0xa1   : > { %v1402_v17 = vpack.c.bf16 %v440_v16, %v440_v16  ;;  %v326_v18 = vpop.f32.mrf.mxu0  ;;  %v364_v19 = vpop.f32.mrf.mxu1 }
  0xa3   : > { %446 = vst.msk [vmem:[#allocation2 + $0xc] sm:$0xf] %vm329_vm1, %v1402_v17  ;;  %v488_v20 = vld [vmem:[#allocation2] sm:$0xf] }
  0xa4   : > { %370 = vrot.lane.b32.xlu1 %v366_v15, %s1258_s11  ;;  %v494_v21 = vsel %vm489_vm2, %v488_v20, 0  ;;  %v577_v22 = vld [vmem:[#allocation2 + $0x4] sm:$0xf]  ;;  %v401_v52 = vpop.f32.mrf.mxu2 }
  0xa5   : > { %503 = vmatpush.bf16.xpose.msrb.mxu1 %v494_v21  ;;  %v582_v23 = vsel %vm489_vm2, %v577_v22, 0  ;;  %v405_v53 = vpack.c.bf16 %v401_v52, %v401_v52 }
  0xa6   : > { %591 = vmatpush.bf16.xpose.msra.mxu0 %v582_v23 }
  0xa7   : > { %407 = vst.msk [vmem:[#allocation2 + $0x8] sm:$0xf] %vm329_vm1, %v405_v53 }
  0xa8   : > { %v442_v24 = vpop.f32.mrf.mxu3 }
  0xa9   : > { %v483_v25 = vpop.f32.mrf.mxu0 }
  0xaa   : > { %v487_v26 = vpack.c.bf16 %v483_v25, %v483_v25  ;;  %v761_v58 = vld [vmem:[#allocation2 + $0xc] sm:$0xf] }
  0xab   : > { %v766_v60 = vsel %vm489_vm2, %v761_v58, 0 }
  0xac   : > { %1024 = vmatmul.msk.bf16.vlgmr.msrb.gmra.mxu1 %vm489_vm2, %v487_v26  ;;  %409 = vrot.lane.b32.xlu1 %v405_v53, %s1258_s11  ;;  %v403_v61 = vpop.f32.mrf.mxu2 }
  0xae   : > { %v669_v0 = vld [vmem:[#allocation2 + $0x8] sm:$0xf] }
  0xaf   : > { %v674_v1 = vsel %vm489_vm2, %v669_v0, 0  ;;  %v1161_v0 = vld [vmem:[%s1516_s5] ss:$0 sm:$0xff] }
  0xb0   : > { %v571_v27 = vpop.f32.mrf.mxu3  ;;  %683 = vmatpush.bf16.xpose.msra.mxu3 %v674_v1 }
  0xb1   : > { %v575_v28 = vpack.c.bf16 %v571_v27, %v571_v27  ;;  %v485_v29 = vpop.f32.mrf.mxu0 }
  0xb3   : > { %1039 = vmatmul.msk.bf16.vlgmr.msra.gmra.mxu0 %vm489_vm2, %v575_v28 }
  0xb8   : > { %v573_v30 = vpop.f32.mrf.mxu3 }
 0x10e   : > { %v333_v33 = vpop.permute.xlu1 %332 }
 0x10f   : > { %335 = vst.msk [vmem:[#allocation3] sm:$0xf] %vm329_vm1, %v333_v33 }
 0x116   : > { %v371_v34 = vpop.permute.xlu1 %370  ;;  %v519_v35 = vld [vmem:[#allocation3] sm:$0xf] }
 0x117   : > { %374 = vst.msk [vmem:[#allocation3 + $0x4] sm:$0xf] %vm329_vm1, %v371_v34  ;;  %v525_v36 = vsel %vm523_vm3, %v519_v35, 0 }
 0x118   : > { %534 = vmatpush.bf16.msrb.mxu2 %v525_v36 }
 0x11c   : > { %660 = vmatpush.bf16.msra.mxu2 %v1097_v45 }
 0x11e   : > { %v608_v37 = vld [vmem:[#allocation3 + $0x4] sm:$0xf]  ;;  %v410_v2 = vpop.permute.xlu1 %409 }
 0x11f   : > { %v613_v38 = vsel %vm523_vm3, %v608_v37, 0  ;;  %413 = vst.msk [vmem:[#allocation3 + $0x8] sm:$0xf] %vm329_vm1, %v410_v2 }
 0x120   : > { %622 = vmatpush.bf16.msra.mxu1 %v613_v38  ;;  %661 = vmatpush.bf16.msra.mxu2 %v1096_v46 }
 0x124   : > { %752 = vmatpush.bf16.msrb.mxu1 %v1099_v47 }
 0x126   : > { %v700_v5 = vld [vmem:[#allocation3 + $0x8] sm:$0xf] }
 0x127   : > { %v705_v6 = vsel %vm523_vm3, %v700_v5, 0 }
 0x128   : > { %753 = vmatpush.bf16.msrb.mxu1 %v1098_v49  ;;  %714 = vmatpush.bf16.msrb.mxu0 %v705_v6 }
 0x129   : > { %v505_v39 = vpop.f32.mrf.mxu1 }
 0x12a   : > { %v509_v40 = vsel %vm489_vm2, %v505_v39, -inf }
 0x12b   : > { %510 = vmax.xlane.f32.xlu0 %v509_v40 }
 0x130   : > { %v593_v41 = vpop.f32.mrf.mxu0 }
 0x131   : > { %v507_v42 = vpop.f32.mrf.mxu1  ;;  %v597_v43 = vsel %vm489_vm2, %v593_v41, -inf }
 0x133   : > { %598 = vmax.xlane.f32.xlu0 %v597_v43 }
 0x138   : > { %v595_v44 = vpop.f32.mrf.mxu0 }
 0x19e   : > { %v511_v48 = vpop.xlane.xlu0 %510 }
 0x19f   : > { %v512_v50 = vsub.f32 %v505_v39, %v511_v48 }
 0x1a1   : > { %v513_v51 = vmul.f32 1.442695, %v512_v50 }
 0x1a3   : > { %1162 = vpow2.f32 %v513_v51 }
 0x1a6   : > { %v599_v54 = vpop.xlane.xlu0 %598 }
 0x1a7   : > { %v600_v55 = vsub.f32 %v593_v41, %v599_v54 }
 0x1a9   : > { %v1163_v56 = vpop.eup %1162  ;;  %v601_v57 = vmul.f32 1.442695, %v600_v55 }
 0x1aa   : > { %v518_v59 = vpack.c.bf16 %v1163_v56, %v1163_v56  ;;  %v515_v23 = vsel %vm489_vm2, %v1163_v56, 0.0 }
 0x1ab   : > { %1164 = vpow2.f32 %v601_v57 }
 0x1ac   : > { %1025 = vmatmul.msk.bf16.vlgmr.msrb.gmra.mxu2 %vm489_vm2, %v518_v59  ;;  %v1101_v59 = vld [vmem:[%s1515_s4 + $0x8] sm:$0xff] }
 0x1ad   : > { %775 = vmatpush.bf16.xpose.msrb.mxu2 %v766_v60  ;;  %851 = vmatpush.bf16.msra.mxu0 %v1101_v59  ;;  %v1100_v60 = vld [vmem:[%s1515_s4] sm:$0xff] }
 0x1b1   : > { %v1165_v62 = vpop.eup %1164  ;;  %852 = vmatpush.bf16.msra.mxu0 %v1100_v60 }
 0x1b2   : > { %v606_v63 = vpack.c.bf16 %v1165_v62, %v1165_v62  ;;  %v603_v21 = vsel %vm489_vm2, %v1165_v62, 0.0 }
 0x1b4   : > { %1040 = vmatmul.msk.bf16.vlgmr.msra.gmra.mxu1 %vm489_vm2, %v606_v63 }
 0x1bc   : > { %1053 = vmatmul.msk.bf16.vlgmr.msra.gmra.mxu2 %vm311_vm0, %v1393_v11 }
 0x1c4   : > { %1068 = vmatmul.msk.bf16.vlgmr.msrb.gmra.mxu1 %vm311_vm0, %v1393_v11 }
 0x22f   : > { %v536_v3 = vpop.f32.mrf.mxu2 }
 0x231   : > { %v624_v4 = vpop.f32.mrf.mxu1 }
 0x237   : > { %v538_v7 = vpop.f32.mrf.mxu2 }
 0x239   : > { %v626_v8 = vpop.f32.mrf.mxu1 }
 0x23f   : > { %v663_v9 = vpop.f32.mrf.mxu2 }
 0x240   : > { %v667_v10 = vpack.c.bf16 %v663_v9, %v663_v9 }
 0x241   : > { %v755_v12 = vpop.f32.mrf.mxu1 }
 0x242   : > { %v759_v13 = vpack.c.bf16 %v755_v12, %v755_v12  ;;  %1054 = vmatmul.msk.bf16.vlgmr.msra.gmra.mxu3 %vm489_vm2, %v667_v10 }
 0x244   : > { %1069 = vmatmul.msk.bf16.vlgmr.msrb.gmra.mxu2 %vm489_vm2, %v759_v13 }
 0x247   : > { %v665_v11 = vpop.f32.mrf.mxu2 }
 0x249   : > { %v757_v14 = vpop.f32.mrf.mxu1 }
 0x2c5   : > { %v685_v15 = vpop.f32.mrf.mxu3 }
 0x2c6   : > { %v689_v16 = vsel %vm489_vm2, %v685_v15, -inf }
 0x2c7   : > { %690 = vmax.xlane.f32.xlu0 %v689_v16  ;;  %v777_v18 = vpop.f32.mrf.mxu2 }
 0x2c8   : > { %v781_v19 = vsel %vm489_vm2, %v777_v18, -inf }
 0x2c9   : > { %782 = vmax.xlane.f32.xlu2 %v781_v19 }
 0x2cd   : > { %v687_v20 = vpop.f32.mrf.mxu3 }
 0x2cf   : > { %v779_v22 = vpop.f32.mrf.mxu2  ;;  %604 = vadd.xlane.f32.xlu0 %v603_v21 }
 0x2e1   : > { %448 = vrot.lane.b32.xlu2 %v1402_v17, %s1258_s11  ;;  %s1260_s11 = smov 16  }
 0x30a   : > { %516 = vadd.xlane.f32.xlu2 %v515_v23 }
 0x33a   : > { %v691_v24 = vpop.xlane.xlu0 %690 }
 0x33b   : > { %v692_v25 = vsub.f32 %v685_v15, %v691_v24 }
 0x33c   : > { %v783_v26 = vpop.xlane.xlu2 %782 }
 0x33d   : > { %v693_v27 = vmul.f32 1.442695, %v692_v25  ;;  %v784_v28 = vsub.f32 %v777_v18, %v783_v26 }
 0x33f   : > { %1166 = vpow2.f32 %v693_v27  ;;  %v785_v29 = vmul.f32 1.442695, %v784_v28 }
 0x341   : > { %1168 = vpow2.f32 %v785_v29 }
 0x342   : > { %v605_v35 = vpop.xlane.xlu0 %604 }
 0x343   : > { %1170 = vrcp.f32 %v605_v35 }
 0x344   : > { %v449_v30 = vpop.permute.xlu2 %448 }
 0x345   : > { %v1167_v31 = vpop.eup %1166  ;;  %452 = vst.msk [vmem:[#allocation3 + $0xc] sm:$0xf] %vm329_vm1, %v449_v30 }
 0x346   : > { %v698_v32 = vpack.c.bf16 %v1167_v31, %v1167_v31  ;;  %v695_v33 = vsel %vm489_vm2, %v1167_v31, 0.0 }
 0x347   : > { %v1169_v34 = vpop.eup %1168  ;;  %696 = vadd.xlane.f32.xlu1 %v695_v33 }
 0x348   : > { %1055 = vmatmul.msk.bf16.vlgmr.msrb.gmra.mxu0 %vm489_vm2, %v698_v32  ;;  %v787_v17 = vsel %vm489_vm2, %v1169_v34, 0.0  ;;  %v790_v38 = vpack.c.bf16 %v1169_v34, %v1169_v34 }
 0x349   : > { %788 = vadd.xlane.f32.xlu0 %v787_v17  ;;  %v1171_v39 = vpop.eup %1170 }
 0x34a   : > { %v629_v40 = vmul.f32 %v1171_v39, %v624_v4 }
 0x34c   : > { %v792_v36 = vld [vmem:[#allocation3 + $0xc] sm:$0xf]  ;;  %v630_v41 = vpack.c.bf16 %v629_v40, %v629_v40 }
 0x34d   : > { %v797_v37 = vsel %vm523_vm3, %v792_v36, 0 }
 0x34e   : > { %806 = vmatpush.bf16.msrb.mxu3 %v797_v37 }
 0x351   : > { %1070 = vmatmul.msk.bf16.vlgmr.msrb.gmra.mxu3 %vm489_vm2, %v790_v38 }
 0x35d   : > { %632 = vrot.lane.b32.xlu0 %v630_v41, %s1259_s8 }
 0x37d   : > { %v517_v42 = vpop.xlane.xlu2 %516 }
 0x37e   : > { %1172 = vrcp.f32 %v517_v42 }
 0x384   : > { %v1173_v43 = vpop.eup %1172 }
 0x385   : > { %v541_v44 = vmul.f32 %v1173_v43, %v536_v3 }
 0x387   : > { %v542_v45 = vpack.c.bf16 %v541_v44, %v541_v44 }
 0x389   : > { %544 = vst.msk [vmem:[#allocation4] sm:$0xf] %vm329_vm1, %v542_v45 }
 0x3ba   : > { %v697_v46 = vpop.xlane.xlu1 %696 }
 0x3bb   : > { %1174 = vrcp.f32 %v697_v46 }
 0x3bc   : > { %v789_v50 = vpop.xlane.xlu0 %788 }
 0x3bd   : > { %1176 = vrcp.f32 %v789_v50 }
 0x3c1   : > { %v1175_v47 = vpop.eup %1174 }
 0x3c3   : > { %v1177_v54 = vpop.eup %1176 }
 0x3c5   : > { %v716_v48 = vpop.f32.mrf.mxu0 }
 0x3c6   : > { %v721_v49 = vmul.f32 %v1175_v47, %v716_v48 }
 0x3c8   : > { %v722_v51 = vpack.c.bf16 %v721_v49, %v721_v49 }
 0x3ca   : > { %724 = vrot.lane.b32.xlu0 %v722_v51, %s1260_s11  ;;  %s277_s11 = scalar_lea.vmem [#allocation5], %s964_s19  ;;  %s1198_s19 = scalar_lea.hbm %s1517_s6, 16 }
 0x3cb   : > { %p1200_p2 = scmp.lt.s32.totalorder %s1198_s19, %s1194_s15 }
 0x3cd   : > { %v718_v52 = vpop.f32.mrf.mxu0  ;;  %p1201_p3 = por %p1200_p2, %p1199_p1 }
 0x3cf   : > { %v633_v53 = vpop.permute.xlu0 %632  ;;  %p1202_p5 = pnand %p1201_p3, %p1197_p0 }
 0x3d0   : > { %636 = vst.msk [vmem:[#allocation4] sm:$0xf] %vm635_vm4, %v633_v53 }
 0x3d4   : > { %v808_v55 = vpop.f32.mrf.mxu3 }
 0x3d5   : > { %v813_v56 = vmul.f32 %v1177_v54, %v808_v55 }
 0x3d7   : > { %v814_v57 = vpack.c.bf16 %v813_v56, %v813_v56 }
 0x3d9   : > { %816 = vrot.lane.b32.xlu1 %v814_v57, %s1261_s12  ;;  %s873_s12 = sshll.u32 %s277_s11, 4  ;;  %s874_s12 = int_to_ptr.vmem [resolvable:$true] %s873_s12 }
 0x3dc   : > { %v810_v58 = vpop.f32.mrf.mxu3 }
 0x43c   : > { %v725_v61 = vpop.permute.xlu0 %724 }
 0x43d   : > { %728 = vst.msk [vmem:[#allocation4] sm:$0xf] %vm727_vm5, %v725_v61 }
 0x44b   : > { %v817_v62 = vpop.permute.xlu1 %816 }
 0x44c   : > { %820 = vst.msk [vmem:[#allocation4] sm:$0xf] %vm819_vm6, %v817_v62 }
 0x453   : > { %v821_v63 = vld [vmem:[#allocation4] sm:$0xf] }
 0x454   : > { %1079 = vmatmul.msk.bf16.vlgmr.msra.gmra.mxu0 %vm311_vm0, %v821_v63 }
 0x4d1   : > { %v854_v1 = vpop.f32.mrf.mxu0 }
 0x4d2   : > { %v855_v2 = vadd.f32 %v1161_v0, %v854_v1 }
 0x4d4   : > { %858 = vst.msk [vmem:[%s277_s11] sm:$0xff] %vm311_vm0, %v855_v2 }
 0x4d5   : > { %1205 = shalt.err (!%p1202_p5)
}
 0x4d6   : > { %1102 = dma.vmem_to_hbm [thread:$0]  (%p1337_p4), %s874_s12, 128, %s876_s13, %s860_s24  }
 0x4d9   : > { %v856_v3 = vpop.f32.mrf.mxu0 }
 0x4da PF: > { %p1108_p6 = scmp.ge.s32.totalorder %s1256_s26, 2  ;;  %s887_s17 = sand.u32 1, %s1236_s21  }
 0x4db   : > { %s888_s28 = scalar_lea.sflag [#allocation6], %s887_s17 }
 0x4dc   : > { %p1105_p7 = pnand %p1108_p6, %p1344_p8 }
 0x4de   : > { %p1106_p9 = pneg %p1105_p7 }
 0x4e0   : > { %1231 = dma.done.wait (%p1106_p9), %s888_s28, 128  }
 0x4e1   : > { %1233 = vsyncadd (%p1106_p9), %s888_s28, 4294967168  ;;  %s19_s26 = sadd.s32 1, %s1256_s26   ;;  %s1520_s21 = smov %s1240_s22 }
 0x4e2   : > { %p16_p10 = scmp.ge.s32.totalorder %s19_s26, 4   ;;  %s1521_s22 = smov %s1244_s23 }
 0x4e3   : > { %s1522_s23 = smov %s1350_s10  ;;  %s1523_s24 = smov %s1252_s25 }
 0x4e4   : > { %s1524_s25 = smov %s1526_s29  ;;  %18 = sbr.rel (!%p16_p10) target bundleno = 4 (0x4), region = 104 }
 0x4e9   :  { %894 = vsyncpa [#allocation6], 1 }
 0x4ea   :  { %896 = vsyncpa [#allocation6 + $0x1], 1 }

</bundles_post_ra>
